<compile_context>
chip_gen: v5e
topology: v5e:2x2
jax: 0.10.0
libtpu: 0.0.40
codegen_flags: <defaults>
</compile_context>

<pallas_src>
import math

import jax
import jax.numpy as jnp
from jax.experimental import pallas as pl
from jax.experimental.pallas import tpu as pltpu


def make_sine_pe(embed_dim: int, max_len: int = 5000, dtype=jnp.float32):
    """Deterministic parameter init, identical to the torch module's __init__."""
    position = jnp.arange(max_len + 1, dtype=jnp.float32)[:, None]          # (L+1, 1)
    div_term = jnp.exp(
        jnp.arange(0, embed_dim, 2, dtype=jnp.float32)
        * (-math.log(10000.0) / embed_dim)
    )                                                                        # (D/2,)
    angles = position * div_term                                             # (L+1, D/2)
    pe = jnp.zeros((max_len + 1, embed_dim), dtype=jnp.float32)
    pe = pe.at[:, 0::2].set(jnp.sin(angles))
    pe = pe.at[:, 1::2].set(jnp.cos(angles))
    return pe[:, None, :].astype(dtype)                                      # (L+1, 1, D)


def _add_pe_kernel(x_ref, pe_ref, o_ref):
    # x_ref/o_ref: (tile_s, B, D); pe_ref: (tile_s, D) or (tile_s, 1, D).
    pe = pe_ref[...]
    if pe.ndim == 2:
        pe = pe[:, None, :]
    o_ref[...] = x_ref[...] + pe


def _choose_tile_s(S: int, row_bytes: int, target_block_bytes: int) -> int:
    """Largest divisor of S whose x-block fits the per-block byte budget.

    Prefers sublane-aligned tiles (multiple of 8, or the full S) so the pe
    stream can be presented as a lane-dense 2D slab.
    """
    max_rows = max(1, target_block_bytes // max(1, row_bytes))
    divisors = [d for d in range(1, S + 1) if S % d == 0]
    fitting = [d for d in divisors if d <= max_rows] or [1]
    aligned = [d for d in fitting if (d % 8 == 0) or (d == S)]
    return max(aligned) if aligned else max(fitting)


def sine_pos_encode(x: jax.Array, pe: jax.Array, *,
                    target_block_bytes: int = 2 << 20) -> jax.Array:
    """x: [S, B, D]; pe: [max_len+1, 1, D]. Returns x + pe[:S] (dropout p=0.0 is identity)."""
    S, B, D = x.shape
    itemsize = jnp.dtype(x.dtype).itemsize
    row_bytes = B * D * itemsize

    tile_s = _choose_tile_s(S, row_bytes, target_block_bytes)
    grid = (S // tile_s,)

    # Match pe dtype to x; squeeze the singleton batch dim when the tile is
    # sublane-aligned (so the (tile_s, D) block satisfies the (8, 128) rule).
    pe_aligned = (tile_s % 8 == 0) or (tile_s == S)
    if pe_aligned:
        pe_in = pe[:S, 0, :].astype(x.dtype)                      # (S, D) lane-dense
        pe_spec = pl.BlockSpec((tile_s, D), lambda s: (s, 0))
    else:
        pe_in = pe[:S].astype(x.dtype)                            # (S, 1, D)
        pe_spec = pl.BlockSpec((tile_s, 1, D), lambda s: (s, 0, 0))

    return pl.pallas_call(
        _add_pe_kernel,
        out_shape=jax.ShapeDtypeStruct((S, B, D), x.dtype),
        grid_spec=pltpu.PrefetchScalarGridSpec(
            num_scalar_prefetch=0,
            grid=grid,
            in_specs=[
                pl.BlockSpec((tile_s, B, D), lambda s: (s, 0, 0)),
                pe_spec,
            ],
            out_specs=pl.BlockSpec((tile_s, B, D), lambda s: (s, 0, 0)),
        ),
        compiler_params=pltpu.CompilerParams(
            dimension_semantics=("parallel",),
            vmem_limit_bytes=32 * 1024 * 1024,
        ),
    )(x, pe_in)
    # TODO(synk): dropout with p>0 would use pltpu.prng_seed/prng_random_bits; p=0.0 here -> identity.
    # TODO(synk): computing the sinusoid table in-kernel (iota + exp/sin on the idle EUP) would
    # drop the pe HBM stream entirely; kept the table input for guaranteed sin/cos lowering support.


if __name__ == "__main__":
    embed_dim = 32
    max_len = 64
    seq_len, batch = 8, 2

    pe = make_sine_pe(embed_dim, max_len=max_len)

    key = jax.random.PRNGKey(0)
    x = jax.random.normal(key, (seq_len, batch, embed_dim), dtype=jnp.float32)

    out = sine_pos_encode(x, pe)
    out = jax.block_until_ready(out)

    # reference check in plain JAX
    ref = x + pe[:seq_len]
    assert out.shape == ref.shape
    assert jnp.allclose(out, ref, atol=1e-6), "mismatch vs reference"

    print("KERNEL_OK")
</pallas_src>

<mosaic_0001>
module attributes {stable_mosaic.version = 11 : i64} {
  func.func @_add_pe_kernel(%arg0: i32, %arg1: memref<8x2x32xf32, #tpu.memory_space<vmem>>, %arg2: memref<8x32xf32, #tpu.memory_space<vmem>>, %arg3: memref<8x2x32xf32, #tpu.memory_space<vmem>>) attributes {dimension_semantics = [#tpu.dimension_semantics<parallel>], iteration_bounds = array<i64: 1>, scalar_prefetch = 0 : i64, scratch_operands = 0 : i64, tpu.core_type = #tpu.core_type<tc>, window_params = [{transform_indices = @transform_0, window_bounds = array<i64: 8, 2, 32>}, {transform_indices = @transform_1, window_bounds = array<i64: 8, 32>}, {transform_indices = @transform_2, window_bounds = array<i64: 8, 2, 32>}]} {
    %c0 = arith.constant 0 : index
    %c0_0 = arith.constant 0 : index
    %0 = vector.load %arg2[%c0, %c0_0] : memref<8x32xf32, #tpu.memory_space<vmem>>, vector<8x32xf32>
    %1 = vector.shape_cast %0 : vector<8x32xf32> to vector<8x1x32xf32>
    %c0_1 = arith.constant 0 : index
    %c0_2 = arith.constant 0 : index
    %c0_3 = arith.constant 0 : index
    %2 = vector.load %arg1[%c0_1, %c0_2, %c0_3] : memref<8x2x32xf32, #tpu.memory_space<vmem>>, vector<8x2x32xf32>
    %3 = vector.broadcast %1 : vector<8x1x32xf32> to vector<8x2x32xf32>
    %4 = arith.addf %2, %3 : vector<8x2x32xf32>
    %c0_4 = arith.constant 0 : index
    %c0_5 = arith.constant 0 : index
    %c0_6 = arith.constant 0 : index
    %5 = vector.load %arg3[%c0_4, %c0_5, %c0_6] : memref<8x2x32xf32, #tpu.memory_space<vmem>>, vector<8x2x32xf32>
    tpu.vector_store %arg3[%c0_4, %c0_5, %c0_6], %4 {strides = array<i32>} : memref<8x2x32xf32, #tpu.memory_space<vmem>>, vector<8x2x32xf32>,
    return
  }
  func.func @transform_0(%arg0: i32) -> (i32, i32, i32) {
    %c0_i32 = arith.constant 0 : i32
    %c0_i32_0 = arith.constant 0 : i32
    %c0_i32_1 = arith.constant 0 : i32
    return %arg0, %c0_i32, %c0_i32_0 : i32, i32, i32
  }
  func.func @transform_1(%arg0: i32) -> (i32, i32) {
    %c0_i32 = arith.constant 0 : i32
    %c0_i32_0 = arith.constant 0 : i32
    return %arg0, %c0_i32 : i32, i32
  }
  func.func @transform_2(%arg0: i32) -> (i32, i32, i32) {
    %c0_i32 = arith.constant 0 : i32
    %c0_i32_0 = arith.constant 0 : i32
    %c0_i32_1 = arith.constant 0 : i32
    return %arg0, %c0_i32, %c0_i32_0 : i32, i32, i32
  }
}

</mosaic_0001>

<bundles_post_ra>
// kernel: tpu_custom_call.1
= control target key start
LH: loop header
LB: loop body
LE: loop exit
PB: predicated region body
PF: predicated region fallthrough
CT: control target
= control target key end

     0   :  { %7 = vsyncpa [#allocation3], 0  ;;  %s238_s0 = inlined_call_operand.hbm [shape: f32[8,2,32], index: 0, kind: input, shape index: {}]   ;;  %s239_s1 = inlined_call_operand.hbm [shape: f32[8,32], index: 1, kind: input, shape index: {}]   ;;  %s240_s2 = inlined_call_operand.hbm [shape: f32[8,2,32], index: 2, kind: output, shape index: {}]  }
   0x1   :  { %8 = vsyncpa [#allocation6], 0 }
   0x2   :  { %9 = vsyncpa [#allocation4], 0  ;;  %s14_s11 = sshll.u32 %s238_s0, 4  ;;  %s195_s12 = smov [#allocation2]   ;;  %s15_s11 = int_to_ptr.hbm [resolvable:$true] %s14_s11 }
   0x3   :  { %s16_s13 = sshll.u32 %s195_s12, 4  ;;  %s28_s16 = sshll.u32 %s239_s1, 4  ;;  %s17_s13 = int_to_ptr.vmem [resolvable:$true] %s16_s13  ;;  %s29_s16 = int_to_ptr.hbm [resolvable:$true] %s28_s16 }
   0x4   :  { %s196_s17 = smov 32   ;;  %s197_s18 = smov 2  }
   0x5   :  { %22 = dma.hbm_to_vmem [thread:$0]  %s15_s11, 256, %s17_s13, [#allocation3], %s196_s17, %s196_s17, %s197_s18  }
   0x6   :  { %s198_s19 = smov [#allocation5]  }
   0x7   :  { %s30_s20 = sshll.u32 %s198_s19, 4  ;;  %s31_s20 = int_to_ptr.vmem [resolvable:$true] %s30_s20 }
   0x8   :  { %33 = dma.hbm_to_vmem [thread:$0]  %s29_s16, 128, %s31_s20, [#allocation6]  }
   0x9   :  { %189 = dma.done.wait [#allocation3], 256  }
   0xa   :  { %190 = vsyncadd [#allocation3], 4294967040 }
   0xb   :  { %191 = dma.done.wait [#allocation6], 128  }
   0xc   :  { %192 = vsyncadd [#allocation6], 4294967168  ;;  %v42_v0 = vld [vmem:[#allocation5] sm:$0xff]  ;;  %v51_v1 = vld [vmem:[#allocation2] sm:$0x3]  ;;  %vm83_vm0 = vcmask 254976  }
   0xd   :  { %v59_v2 = vperm.slane %v42_v0, 0  ;;  %v44_v3 = vrot.slane %v42_v0, 1  ;;  %v52_v4 = vld [vmem:[#allocation2 + $0x2] sm:$0x3]  ;;  %v45_v5 = vrot.slane %v42_v0, 2  ;;  %v46_v6 = vrot.slane %v42_v0, 3 }
   0xe   :  { %v53_v7 = vld [vmem:[#allocation2 + $0x4] sm:$0x3]  ;;  %v54_v8 = vld [vmem:[#allocation2 + $0x6] sm:$0x3]  ;;  %v47_v9 = vrot.slane %v42_v0, 4  ;;  %v48_v10 = vrot.slane %v42_v0, 5 }
   0xf   :  { %v75_v11 = vadd.f32 %v59_v2, %v51_v1  ;;  %v60_v12 = vperm.slane %v44_v3, 0  ;;  %v61_v13 = vperm.slane %v45_v5, 0  ;;  %v62_v14 = vperm.slane %v46_v6, 0  ;;  %v55_v15 = vld [vmem:[#allocation2 + $0x8] sm:$0x3]  ;;  %s199_s0 = smov [#allocation7]  }
  0x10   :  { %v63_v16 = vperm.slane %v47_v9, 0  ;;  %v56_v17 = vld [vmem:[#allocation2 + $0xa] sm:$0x3]  ;;  %v64_v18 = vperm.slane %v48_v10, 0  ;;  %v49_v19 = vrot.slane %v42_v0, 6  ;;  %v50_v20 = vrot.slane %v42_v0, 7 }
  0x11   :  { %84 = vst.msk [vmem:[#allocation7] sm:$0x3] %vm83_vm0, %v75_v11  ;;  %v76_v21 = vadd.f32 %v60_v12, %v52_v4  ;;  %v77_v22 = vadd.f32 %v61_v13, %v53_v7  ;;  %v78_v23 = vadd.f32 %v62_v14, %v54_v8  ;;  %v57_v24 = vld [vmem:[#allocation2 + $0xc] sm:$0x3]  ;;  %v58_v27 = vld [vmem:[#allocation2 + $0xe] sm:$0x3] }
  0x12   :  { %v79_v25 = vadd.f32 %v63_v16, %v55_v15  ;;  %v65_v26 = vperm.slane %v49_v19, 0  ;;  %v66_v28 = vperm.slane %v50_v20, 0  ;;  %v80_v29 = vadd.f32 %v64_v18, %v56_v17  ;;  %s96_s1 = sshll.u32 %s199_s0, 4  ;;  %s98_s23 = sshll.u32 %s240_s2, 4  ;;  %s97_s1 = int_to_ptr.vmem [resolvable:$true] %s96_s1  ;;  %s99_s23 = int_to_ptr.hbm [resolvable:$true] %s98_s23 }
  0x13   :  { %85 = vst.msk [vmem:[#allocation7 + $0x2] sm:$0x3] %vm83_vm0, %v76_v21 }
  0x14   :  { %86 = vst.msk [vmem:[#allocation7 + $0x4] sm:$0x3] %vm83_vm0, %v77_v22  ;;  %v81_v30 = vadd.f32 %v65_v26, %v57_v24  ;;  %v82_v31 = vadd.f32 %v66_v28, %v58_v27 }
  0x15   :  { %87 = vst.msk [vmem:[#allocation7 + $0x6] sm:$0x3] %vm83_vm0, %v78_v23 }
  0x16   :  { %88 = vst.msk [vmem:[#allocation7 + $0x8] sm:$0x3] %vm83_vm0, %v79_v25 }
  0x17   :  { %89 = vst.msk [vmem:[#allocation7 + $0xa] sm:$0x3] %vm83_vm0, %v80_v29 }
  0x18   :  { %90 = vst.msk [vmem:[#allocation7 + $0xc] sm:$0x3] %vm83_vm0, %v81_v30 }
  0x19   :  { %91 = vst.msk [vmem:[#allocation7 + $0xe] sm:$0x3] %vm83_vm0, %v82_v31 }
  0x1a   :  { %104 = dma.vmem_to_hbm [thread:$0]  %s97_s1, 256, %s99_s23, [#allocation4], %s196_s17, %s196_s17, %s197_s18  }
  0x1b   :  { %193 = dma.done.wait [#allocation4], 256  }
  0x1c   :  { %194 = vsyncadd [#allocation4], 4294967040 }
  0x1d   :  { %109 = vsyncpa [#allocation3], 1 }
  0x1e   :  { %110 = vsyncpa [#allocation6], 1 }
  0x1f   :  { %111 = vsyncpa [#allocation4], 1 }

</bundles_post_ra>
